<compile_context>
chip_gen: v5e
topology: v5e:2x2
jax: 0.10.0
libtpu: 0.0.40
codegen_flags: <defaults>
</compile_context>

<pallas_src>
import math

import jax
import jax.numpy as jnp
from jax import lax
from jax.experimental import pallas as pl
from jax.experimental.pallas import tpu as pltpu


def _round_up(x, m):
    return ((x + m - 1) // m) * m


# ----------------------------------------------------------------------------
# Kernel E1: support2[rows] = relu(adj[rows, :] @ support1 + b1) @ W2
# ----------------------------------------------------------------------------
def _gcn1_kernel(adj_ref, s1_ref, b1_ref, w2_ref, s2_out_ref):
    h = jnp.dot(adj_ref[...], s1_ref[...], preferred_element_type=jnp.float32)
    h = jnp.maximum(h + b1_ref[...], 0.0)          # bias + ReLU in f32
    # TODO(synk): F.dropout(p=0.5, training=True) is stochastic; eval-mode
    # identity is used here (deterministic inference semantics).
    s2 = jnp.dot(h.astype(w2_ref.dtype), w2_ref[...],
                 preferred_element_type=jnp.float32)
    s2_out_ref[...] = s2.astype(s2_out_ref.dtype)


# ----------------------------------------------------------------------------
# Kernel E2: z[rows] = adj[rows, :] @ support2 + b2     (f32 output)
# ----------------------------------------------------------------------------
def _gcn2_kernel(adj_ref, s2_ref, b2_ref, z_out_ref):
    z = jnp.dot(adj_ref[...], s2_ref[...], preferred_element_type=jnp.float32)
    z_out_ref[...] = (z + b2_ref[...]).astype(z_out_ref.dtype)


# ----------------------------------------------------------------------------
# Kernel D: adj_rec[rows, cols] = sigmoid(z[rows] @ zT[:, cols])
#   zT is pre-transposed outside the kernel -> standard [K, N] MXU layout,
#   no per-step XLU transposes.  sigmoid via a single tanh (EUP).
# ----------------------------------------------------------------------------
def _decoder_kernel(z_ref, zt_ref, rec_ref):
    logits = jnp.dot(z_ref[...], zt_ref[...],
                     preferred_element_type=jnp.float32)
    rec_ref[...] = (0.5 * (jnp.tanh(0.5 * logits) + 1.0)).astype(rec_ref.dtype)


# ----------------------------------------------------------------------------
# Wrapper: pad to lane-dense shapes, run the three kernels, slice back.
# Zero-padding is numerically exact: padded feature/hidden/code columns
# contribute 0, padded node rows/cols are sliced away.
# ----------------------------------------------------------------------------
def gae_forward(params, x, adj, *, compute_dtype=jnp.bfloat16, rec_dtype=None,
                tm=256, tn=256, vmem_limit_bytes=56 * 1024 * 1024):
    n, f = x.shape
    hdim = params["w1"].shape[1]
    cdim = params["w2"].shape[1]
    assert adj.shape == (n, n)

    cdt = compute_dtype
    rec_dt = compute_dtype if rec_dtype is None else rec_dtype

    f_p = _round_up(f, 128)
    h_p = _round_up(hdim, 128)
    c_p = _round_up(cdim, 128)
    n_p = _round_up(n, math.lcm(tm, tn))
    nr = n_p // tm                       # encoder / decoder row tiles
    nc = n_p // tn                       # decoder column tiles

    def pad2(a, shape):
        return jnp.pad(a, ((0, shape[0] - a.shape[0]),
                           (0, shape[1] - a.shape[1])))

    x_p = pad2(x, (n_p, f_p)).astype(cdt)
    adj_p = pad2(adj, (n_p, n_p)).astype(cdt)
    w1_p = pad2(params["w1"], (f_p, h_p)).astype(cdt)
    w2_p = pad2(params["w2"], (h_p, c_p)).astype(cdt)
    b1_p = pad2(params["b1"].reshape(1, -1), (1, h_p)).astype(jnp.float32)
    b2_p = pad2(params["b2"].reshape(1, -1), (1, c_p)).astype(jnp.float32)

    # support1 = x @ W1 — tiny (N x f x h); hoisted to XLA (perf review #9).
    s1 = jnp.dot(x_p, w1_p, precision=lax.Precision.HIGHEST,
                 preferred_element_type=jnp.float32).astype(cdt)

    enc_params = pltpu.CompilerParams(
        dimension_semantics=("parallel",),          # row tiles independent
        vmem_limit_bytes=vmem_limit_bytes,
    )

    # ---- Layer 1 (fused with h @ W2): streams adj once ----------------------
    s2 = pl.pallas_call(
        _gcn1_kernel,
        out_shape=jax.ShapeDtypeStruct((n_p, c_p), cdt),
        grid_spec=pltpu.PrefetchScalarGridSpec(
            num_scalar_prefetch=0,
            grid=(nr,),
            in_specs=[
                pl.BlockSpec((tm, n_p), lambda i: (i, 0)),    # adj row panel
                pl.BlockSpec((n_p, h_p), lambda i: (0, 0)),   # support1 (resident)
                pl.BlockSpec((1, h_p), lambda i: (0, 0)),     # b1
                pl.BlockSpec((h_p, c_p), lambda i: (0, 0)),   # W2 (resident)
            ],
            out_specs=pl.BlockSpec((tm, c_p), lambda i: (i, 0)),
        ),
        compiler_params=enc_params,
    )(adj_p, s1, b1_p, w2_p)

    # ---- Layer 2: streams adj a second time ---------------------------------
    z_pad = pl.pallas_call(
        _gcn2_kernel,
        out_shape=jax.ShapeDtypeStruct((n_p, c_p), jnp.float32),
        grid_spec=pltpu.PrefetchScalarGridSpec(
            num_scalar_prefetch=0,
            grid=(nr,),
            in_specs=[
                pl.BlockSpec((tm, n_p), lambda i: (i, 0)),    # adj row panel
                pl.BlockSpec((n_p, c_p), lambda i: (0, 0)),   # support2 (resident)
                pl.BlockSpec((1, c_p), lambda i: (0, 0)),     # b2
            ],
            out_specs=pl.BlockSpec((tm, c_p), lambda i: (i, 0)),
        ),
        compiler_params=enc_params,
    )(adj_p, s2, b2_p)

    # ---- Decoder: 2-D (row, col) grid, both parallel (v7x megacore) ---------
    z_dec = z_pad.astype(cdt)
    zt_dec = z_dec.T                                  # (c_p, n_p), tiny in XLA
    rec_pad = pl.pallas_call(
        _decoder_kernel,
        out_shape=jax.ShapeDtypeStruct((n_p, n_p), rec_dt),
        grid_spec=pltpu.PrefetchScalarGridSpec(
            num_scalar_prefetch=0,
            grid=(nr, nc),
            in_specs=[
                pl.BlockSpec((tm, c_p), lambda i, j: (i, 0)),  # z rows
                pl.BlockSpec((c_p, tn), lambda i, j: (0, j)),  # zT cols
            ],
            out_specs=pl.BlockSpec((tm, tn), lambda i, j: (i, j)),
        ),
        compiler_params=pltpu.CompilerParams(
            dimension_semantics=("parallel", "parallel"),
            vmem_limit_bytes=vmem_limit_bytes,
        ),
    )(z_dec, zt_dec)

    return z_pad[:n, :cdim], rec_pad[:n, :n]


# ----------------------------------------------------------------------------
# Parameter init (matches GraphConvolutionLayer.reset_parameters).
# ----------------------------------------------------------------------------
def init_params(key, feature_size, hidden_size, code_size):
    k1, k2, k3, k4 = jax.random.split(key, 4)
    stdv1 = 1.0 / math.sqrt(hidden_size)
    stdv2 = 1.0 / math.sqrt(code_size)
    return {
        "w1": jax.random.uniform(k1, (feature_size, hidden_size), jnp.float32,
                                 -stdv1, stdv1),
        "b1": jax.random.uniform(k2, (1, hidden_size), jnp.float32,
                                 -stdv1, stdv1),
        "w2": jax.random.uniform(k3, (hidden_size, code_size), jnp.float32,
                                 -stdv2, stdv2),
        "b2": jax.random.uniform(k4, (1, code_size), jnp.float32,
                                 -stdv2, stdv2),
    }


if __name__ == "__main__":
    # Small shapes consistent with the module: N=16 nodes, feature=32,
    # hidden=16, code=8.
    N, FEATURE, HIDDEN, CODE = 16, 32, 16, 8

    key = jax.random.PRNGKey(0)
    kx, kadj, kparams = jax.random.split(key, 3)

    x = jax.random.normal(kx, (N, FEATURE), jnp.float32)
    # Symmetric row-normalized adjacency with self loops (dense).
    a = (jax.random.uniform(kadj, (N, N)) > 0.7).astype(jnp.float32)
    a = jnp.maximum(a, a.T) + jnp.eye(N, dtype=jnp.float32)
    adj = a / jnp.sum(a, axis=1, keepdims=True)

    params = init_params(kparams, FEATURE, HIDDEN, CODE)

    # Plain-JAX reference (same math, eval-mode dropout), full precision.
    hp = lax.Precision.HIGHEST
    h_ref = jnp.maximum(
        jnp.dot(adj, jnp.dot(x, params["w1"], precision=hp), precision=hp)
        + params["b1"], 0.0)
    z_ref = (jnp.dot(adj, jnp.dot(h_ref, params["w2"], precision=hp),
                     precision=hp) + params["b2"])
    rec_ref = jax.nn.sigmoid(jnp.dot(z_ref, z_ref.T, precision=hp))

    # 1) f32 compute path (exact module semantics, f32 adj_rec).
    z32, rec32 = gae_forward(params, x, adj, compute_dtype=jnp.float32)
    jax.block_until_ready((z32, rec32))
    assert z32.shape == (N, CODE) and rec32.shape == (N, N)
    assert jnp.allclose(z32, z_ref, atol=2e-4, rtol=2e-4)
    assert jnp.allclose(rec32, rec_ref, atol=2e-4, rtol=2e-4)

    # 2) Default performance path: bf16 operands / f32 accumulate, bf16 rec.
    zbf, recbf = gae_forward(params, x, adj)
    jax.block_until_ready((zbf, recbf))
    assert zbf.shape == (N, CODE) and recbf.shape == (N, N)
    assert jnp.allclose(zbf, z_ref, atol=5e-2, rtol=5e-2)
    assert jnp.allclose(recbf.astype(jnp.float32), rec_ref,
                        atol=5e-2, rtol=5e-2)

    print("KERNEL_OK")
</pallas_src>

<mosaic_0001>
module attributes {stable_mosaic.version = 11 : i64} {
  func.func @_gcn1_kernel(%arg0: i32, %arg1: memref<256x256xf32, #tpu.memory_space<vmem>>, %arg2: memref<256x128xf32, #tpu.memory_space<vmem>>, %arg3: memref<1x128xf32, #tpu.memory_space<vmem>>, %arg4: memref<128x128xf32, #tpu.memory_space<vmem>>, %arg5: memref<256x128xf32, #tpu.memory_space<vmem>>) attributes {dimension_semantics = [#tpu.dimension_semantics<parallel>], iteration_bounds = array<i64: 1>, scalar_prefetch = 0 : i64, scratch_operands = 0 : i64, tpu.core_type = #tpu.core_type<tc>, window_params = [{transform_indices = @transform_0, window_bounds = array<i64: 256, 256>}, {pipeline_mode = #tpu.pipeline_mode<synchronous>, transform_indices = @transform_1, window_bounds = array<i64: 256, 128>}, {pipeline_mode = #tpu.pipeline_mode<synchronous>, transform_indices = @transform_2, window_bounds = array<i64: 1, 128>}, {pipeline_mode = #tpu.pipeline_mode<synchronous>, transform_indices = @transform_3, window_bounds = array<i64: 128, 128>}, {transform_indices = @transform_4, window_bounds = array<i64: 256, 128>}]} {
    %c0 = arith.constant 0 : index
    %c0_0 = arith.constant 0 : index
    %0 = vector.load %arg1[%c0, %c0_0] : memref<256x256xf32, #tpu.memory_space<vmem>>, vector<256x256xf32>
    %c0_1 = arith.constant 0 : index
    %c0_2 = arith.constant 0 : index
    %1 = vector.load %arg2[%c0_1, %c0_2] : memref<256x128xf32, #tpu.memory_space<vmem>>, vector<256x128xf32>
    %cst = arith.constant dense<0.000000e+00> : vector<256x128xf32>
    %2 = tpu.matmul %0, %1, %cst {dimension_numbers = #tpu.dot_dimension_numbers<[1], [0], [0], [1], [0, 0, 1, 1], [], []>} : vector<256x256xf32>, vector<256x128xf32>, vector<256x128xf32> -> vector<256x128xf32>
    %c0_3 = arith.constant 0 : index
    %c0_4 = arith.constant 0 : index
    %3 = vector.load %arg3[%c0_3, %c0_4] : memref<1x128xf32, #tpu.memory_space<vmem>>, vector<1x128xf32>
    %4 = vector.broadcast %3 : vector<1x128xf32> to vector<256x128xf32>
    %5 = arith.addf %2, %4 : vector<256x128xf32>
    %cst_5 = arith.constant 0.000000e+00 : f32
    %6 = vector.broadcast %cst_5 : f32 to vector<256x128xf32>
    %7 = arith.maximumf %5, %6 : vector<256x128xf32>
    %c0_6 = arith.constant 0 : index
    %c0_7 = arith.constant 0 : index
    %8 = vector.load %arg4[%c0_6, %c0_7] : memref<128x128xf32, #tpu.memory_space<vmem>>, vector<128x128xf32>
    %cst_8 = arith.constant dense<0.000000e+00> : vector<256x128xf32>
    %9 = tpu.matmul %7, %8, %cst_8 {dimension_numbers = #tpu.dot_dimension_numbers<[1], [0], [0], [1], [0, 0, 1, 1], [], []>} : vector<256x128xf32>, vector<128x128xf32>, vector<256x128xf32> -> vector<256x128xf32>
    %c0_9 = arith.constant 0 : index
    %c0_10 = arith.constant 0 : index
    %10 = vector.load %arg5[%c0_9, %c0_10] : memref<256x128xf32, #tpu.memory_space<vmem>>, vector<256x128xf32>
    tpu.vector_store %arg5[%c0_9, %c0_10], %9 {strides = array<i32>} : memref<256x128xf32, #tpu.memory_space<vmem>>, vector<256x128xf32>,
    return
  }
  func.func @transform_0(%arg0: i32) -> (i32, i32) {
    %c0_i32 = arith.constant 0 : i32
    %c0_i32_0 = arith.constant 0 : i32
    return %arg0, %c0_i32 : i32, i32
  }
  func.func @transform_1(%arg0: i32) -> (i32, i32) {
    %c0_i32 = arith.constant 0 : i32
    %c0_i32_0 = arith.constant 0 : i32
    %c0_i32_1 = arith.constant 0 : i32
    return %c0_i32, %c0_i32_0 : i32, i32
  }
  func.func @transform_2(%arg0: i32) -> (i32, i32) {
    %c0_i32 = arith.constant 0 : i32
    %c0_i32_0 = arith.constant 0 : i32
    %c0_i32_1 = arith.constant 0 : i32
    return %c0_i32, %c0_i32_0 : i32, i32
  }
  func.func @transform_3(%arg0: i32) -> (i32, i32) {
    %c0_i32 = arith.constant 0 : i32
    %c0_i32_0 = arith.constant 0 : i32
    %c0_i32_1 = arith.constant 0 : i32
    return %c0_i32, %c0_i32_0 : i32, i32
  }
  func.func @transform_4(%arg0: i32) -> (i32, i32) {
    %c0_i32 = arith.constant 0 : i32
    %c0_i32_0 = arith.constant 0 : i32
    return %arg0, %c0_i32 : i32, i32
  }
}

</mosaic_0001>

<bundles_post_ra>
// kernel: tpu_custom_call.1
= control target key start
LH: loop header
LB: loop body
LE: loop exit
PB: predicated region body
PF: predicated region fallthrough
CT: control target
= control target key end

     0   :  { %9 = vsyncpa [#allocation3], 0  ;;  %s914_s0 = inlined_call_operand.hbm [shape: f32[256,256], index: 0, kind: input, shape index: {}]   ;;  %s915_s1 = inlined_call_operand.hbm [shape: f32[256,128], index: 1, kind: input, shape index: {}]   ;;  %s916_s2 = inlined_call_operand.vmem [shape: f32[1,128], index: 2, kind: input, shape index: {}]   ;;  %s917_s3 = inlined_call_operand.hbm [shape: f32[128,128], index: 3, kind: input, shape index: {}]   ;;  %s918_s4 = inlined_call_operand.hbm [shape: f32[256,128], index: 4, kind: output, shape index: {}]  }
   0x1   :  { %10 = vsyncpa [#allocation6], 0  ;;  %s29_s17 = sshll.u32 %s915_s1, 4  ;;  %s30_s17 = int_to_ptr.hbm [resolvable:$true] %s29_s17 }
   0x2   :  { %11 = vsyncpa [#allocation4], 0  ;;  %s763_s18 = smov [#allocation5]   ;;  %s16_s22 = sshll.u32 %s914_s0, 4  ;;  %s17_s22 = int_to_ptr.hbm [resolvable:$true] %s16_s22 }
   0x3   :  { %s31_s19 = sshll.u32 %s763_s18, 4  ;;  %s764_s23 = smov 128   ;;  %s32_s19 = int_to_ptr.vmem [resolvable:$true] %s31_s19 }
   0x4   :  { %s765_s24 = smov 8   ;;  %s766_s25 = smov [#allocation2]  }
   0x5   :  { %37 = dma.hbm_to_vmem [thread:$0]  %s30_s17, 4096, %s32_s19, [#allocation6], %s764_s23, %s764_s23, %s765_s24  }
   0x6   :  { %s18_s26 = sshll.u32 %s766_s25, 4  ;;  %s767_s1 = smov 256   ;;  %s19_s26 = int_to_ptr.vmem [resolvable:$true] %s18_s26 }
   0x7   :  { %s768_s27 = smov 16   ;;  %s44_s30 = sshll.u32 %s917_s3, 4  ;;  %s45_s30 = int_to_ptr.hbm [resolvable:$true] %s44_s30 }
   0x8   :  { %24 = dma.hbm_to_vmem [thread:$0]  %s17_s22, 8192, %s19_s26, [#allocation3], %s767_s1, %s767_s1, %s768_s27  }
   0x9   :  { %s769_s5 = smov [#allocation7]  }
   0xa   :  { %s46_s0 = sshll.u32 %s769_s5, 4  ;;  %s47_s0 = int_to_ptr.vmem [resolvable:$true] %s46_s0 }
   0xb   :  { %52 = dma.hbm_to_vmem [thread:$0]  %s45_s30, 2048, %s47_s0, [#allocation6], %s764_s23, %s764_s23, %s765_s24  }
   0xc   :  { %757 = dma.done.wait [#allocation3], 8192  }
   0xd   :  { %758 = vsyncadd [#allocation3], 4294959104 }
   0xe   :  { %759 = dma.done.wait [#allocation6], 6144  }
   0xf   :  { %760 = vsyncadd [#allocation6], 4294961152  ;;  %v144_v0 = vld [vmem:[#allocation5 + $0x78] sm:$0xff]  ;;  %v143_v1 = vld [vmem:[#allocation5 + $0x70] sm:$0xff]  ;;  %s590_s10 = sshll.u32 %s918_s4, 4  ;;  %s591_s10 = int_to_ptr.hbm [resolvable:$true] %s590_s10 }
  0x10   :  { %v811_v2 = vld [vmem:[#allocation5 + $0xf8] sm:$0xff]  ;;  %165 = vmatpush.msra.mxu0 %v144_v0  ;;  %604 = vmatpush.msra.mxu3 %v144_v0  ;;  %v813_v3 = vld [vmem:[#allocation5 + $0xf0] sm:$0xff]  ;;  %v142_v4 = vld [vmem:[#allocation5 + $0x68] sm:$0xff] }
  0x11   :  { %278 = vmatpush.msra.mxu1 %v811_v2  ;;  %v816_v5 = vld [vmem:[#allocation5 + $0xe8] sm:$0xff]  ;;  %v141_v6 = vld [vmem:[#allocation5 + $0x60] sm:$0xff]  ;;  %v140_v8 = vld [vmem:[#allocation5 + $0x58] sm:$0xff] }
  0x12   :  { %166 = vmatpush.msra.mxu0 %v143_v1  ;;  %605 = vmatpush.msra.mxu3 %v143_v1  ;;  %v819_v7 = vld [vmem:[#allocation5 + $0xe0] sm:$0xff]  ;;  %v822_v9 = vld [vmem:[#allocation5 + $0xd8] sm:$0xff]  ;;  %v139_v10 = vld [vmem:[#allocation5 + $0x50] sm:$0xff] }
  0x13   :  { %279 = vmatpush.msra.mxu1 %v813_v3  ;;  %v825_v11 = vld [vmem:[#allocation5 + $0xd0] sm:$0xff]  ;;  %v138_v12 = vld [vmem:[#allocation5 + $0x48] sm:$0xff]  ;;  %v137_v14 = vld [vmem:[#allocation5 + $0x40] sm:$0xff] }
  0x14   :  { %167 = vmatpush.msra.mxu0 %v142_v4  ;;  %606 = vmatpush.msra.mxu3 %v142_v4  ;;  %v828_v13 = vld [vmem:[#allocation5 + $0xc8] sm:$0xff]  ;;  %v831_v15 = vld [vmem:[#allocation5 + $0xc0] sm:$0xff]  ;;  %v136_v16 = vld [vmem:[#allocation5 + $0x38] sm:$0xff] }
  0x15   :  { %280 = vmatpush.msra.mxu1 %v816_v5  ;;  %v834_v17 = vld [vmem:[#allocation5 + $0xb8] sm:$0xff]  ;;  %v135_v18 = vld [vmem:[#allocation5 + $0x30] sm:$0xff]  ;;  %v134_v20 = vld [vmem:[#allocation5 + $0x28] sm:$0xff] }
  0x16   :  { %168 = vmatpush.msra.mxu0 %v141_v6  ;;  %607 = vmatpush.msra.mxu3 %v141_v6  ;;  %v151_v19 = vld [vmem:[#allocation5 + $0xb0] sm:$0xff]  ;;  %v150_v21 = vld [vmem:[#allocation5 + $0xa8] sm:$0xff]  ;;  %v133_v22 = vld [vmem:[#allocation5 + $0x20] sm:$0xff] }
  0x17   :  { %281 = vmatpush.msra.mxu1 %v819_v7  ;;  %v149_v23 = vld [vmem:[#allocation5 + $0xa0] sm:$0xff]  ;;  %v132_v24 = vld [vmem:[#allocation5 + $0x18] sm:$0xff]  ;;  %v131_v26 = vld [vmem:[#allocation5 + $0x10] sm:$0xff] }
  0x18   :  { %169 = vmatpush.msra.mxu0 %v140_v8  ;;  %608 = vmatpush.msra.mxu3 %v140_v8  ;;  %v148_v25 = vld [vmem:[#allocation5 + $0x98] sm:$0xff]  ;;  %v147_v27 = vld [vmem:[#allocation5 + $0x90] sm:$0xff]  ;;  %v130_v28 = vld [vmem:[#allocation5 + $0x8] sm:$0xff] }
  0x19   :  { %282 = vmatpush.msra.mxu1 %v822_v9  ;;  %v146_v29 = vld [vmem:[#allocation5 + $0x88] sm:$0xff]  ;;  %v129_v30 = vld [vmem:[#allocation5] sm:$0xff]  ;;  %v67_v35 = vld [vmem:[#allocation2 + $0x10] sm:$0xff] }
  0x1a   :  { %170 = vmatpush.msra.mxu0 %v139_v10  ;;  %609 = vmatpush.msra.mxu3 %v139_v10  ;;  %v65_v31 = vld [vmem:[#allocation2] sm:$0xff]  ;;  %v66_v34 = vld [vmem:[#allocation2 + $0x8] sm:$0xff]  ;;  %v115_v36 = vld [vmem:[#allocation2 + $0x190] sm:$0xff] }
  0x1b   :  { %283 = vmatpush.msra.mxu1 %v825_v11  ;;  %v113_v32 = vld [vmem:[#allocation2 + $0x180] sm:$0xff]  ;;  %v68_v37 = vld [vmem:[#allocation2 + $0x18] sm:$0xff]  ;;  %v70_v40 = vld [vmem:[#allocation2 + $0x28] sm:$0xff] }
  0x1c   :  { %171 = vmatpush.msra.mxu0 %v138_v12  ;;  %610 = vmatpush.msra.mxu3 %v138_v12  ;;  %v145_v33 = vld [vmem:[#allocation5 + $0x80] sm:$0xff]  ;;  %v71_v41 = vld [vmem:[#allocation2 + $0x30] sm:$0xff]  ;;  %v72_v43 = vld [vmem:[#allocation2 + $0x38] sm:$0xff] }
  0x1d   :  { %284 = vmatpush.msra.mxu1 %v828_v13  ;;  %v69_v38 = vld [vmem:[#allocation2 + $0x20] sm:$0xff]  ;;  %v119_v42 = vld [vmem:[#allocation2 + $0x1b0] sm:$0xff]  ;;  %v74_v46 = vld [vmem:[#allocation2 + $0x48] sm:$0xff] }
  0x1e   :  { %172 = vmatpush.msra.mxu0 %v137_v14  ;;  %611 = vmatpush.msra.mxu3 %v137_v14  ;;  %v117_v39 = vld [vmem:[#allocation2 + $0x1a0] sm:$0xff]  ;;  %v75_v47 = vld [vmem:[#allocation2 + $0x50] sm:$0xff]  ;;  %v76_v49 = vld [vmem:[#allocation2 + $0x58] sm:$0xff] }
  0x1f   :  { %285 = vmatpush.msra.mxu1 %v831_v15  ;;  %v73_v44 = vld [vmem:[#allocation2 + $0x40] sm:$0xff]  ;;  %v123_v48 = vld [vmem:[#allocation2 + $0x1d0] sm:$0xff]  ;;  %v78_v52 = vld [vmem:[#allocation2 + $0x68] sm:$0xff] }
  0x20   :  { %173 = vmatpush.msra.mxu0 %v136_v16  ;;  %612 = vmatpush.msra.mxu3 %v136_v16  ;;  %v121_v45 = vld [vmem:[#allocation2 + $0x1c0] sm:$0xff]  ;;  %v79_v53 = vld [vmem:[#allocation2 + $0x70] sm:$0xff]  ;;  %v80_v55 = vld [vmem:[#allocation2 + $0x78] sm:$0xff] }
  0x21   :  { %286 = vmatpush.msra.mxu1 %v834_v17  ;;  %v77_v50 = vld [vmem:[#allocation2 + $0x60] sm:$0xff]  ;;  %v127_v54 = vld [vmem:[#allocation2 + $0x1f0] sm:$0xff]  ;;  %v114_v57 = vld [vmem:[#allocation2 + $0x188] sm:$0xff] }
  0x22   :  { %174 = vmatpush.msra.mxu0 %v135_v18  ;;  %613 = vmatpush.msra.mxu3 %v135_v18  ;;  %v125_v51 = vld [vmem:[#allocation2 + $0x1e0] sm:$0xff]  ;;  %v82_v58 = vld [vmem:[#allocation2 + $0x88] sm:$0xff]  ;;  %v438_v59 = vld [vmem:[#allocation7 + $0x78] sm:$0xff] }
  0x23   :  { %287 = vmatpush.msra.mxu1 %v151_v19  ;;  %v81_v56 = vld [vmem:[#allocation2 + $0x80] sm:$0xff]  ;;  %v437_v60 = vld [vmem:[#allocation7 + $0x70] sm:$0xff]  ;;  %439 = vmatpush.msra.mxu2 %v438_v59  ;;  %v116_v62 = vld [vmem:[#allocation2 + $0x198] sm:$0xff] }
  0x24   :  { %175 = vmatpush.msra.mxu0 %v134_v20  ;;  %614 = vmatpush.msra.mxu3 %v134_v20  ;;  %v83_v61 = vld [vmem:[#allocation2 + $0x90] sm:$0xff]  ;;  %v84_v63 = vld [vmem:[#allocation2 + $0x98] sm:$0xff]  ;;  %v436_v0 = vld [vmem:[#allocation7 + $0x68] sm:$0xff] }
  0x25   :  { %288 = vmatpush.msra.mxu1 %v150_v21  ;;  %440 = vmatpush.msra.mxu2 %v437_v60  ;;  %v435_v1 = vld [vmem:[#allocation7 + $0x60] sm:$0xff]  ;;  %v86_v6 = vld [vmem:[#allocation2 + $0xa8] sm:$0xff]  ;;  %v429_v10 = vld [vmem:[#allocation7 + $0x30] sm:$0xff] }
  0x26   :  { %176 = vmatpush.msra.mxu0 %v133_v22  ;;  %615 = vmatpush.msra.mxu3 %v133_v22  ;;  %v85_v4 = vld [vmem:[#allocation2 + $0xa0] sm:$0xff]  ;;  %v120_v12 = vld [vmem:[#allocation2 + $0x1b8] sm:$0xff]  ;;  %v428_v14 = vld [vmem:[#allocation7 + $0x28] sm:$0xff] }
  0x27   :  { %289 = vmatpush.msra.mxu1 %v149_v23  ;;  %441 = vmatpush.msra.mxu2 %v436_v0  ;;  %v431_v8 = vld [vmem:[#allocation7 + $0x40] sm:$0xff]  ;;  %v426_v16 = vld [vmem:[#allocation7 + $0x18] sm:$0xff]  ;;  %v122_v18 = vld [vmem:[#allocation2 + $0x1c8] sm:$0xff] }
  0x28   :  { %177 = vmatpush.msra.mxu0 %v132_v24  ;;  %616 = vmatpush.msra.mxu3 %v132_v24  ;;  %v90_v20 = vld [vmem:[#allocation2 + $0xc8] sm:$0xff]  ;;  %v423_v22 = vld [vmem:[#allocation7] sm:$0xff]  ;;  %v124_v24 = vld [vmem:[#allocation2 + $0x1d8] sm:$0xff] }
  0x29   :  { %290 = vmatpush.msra.mxu1 %v148_v25  ;;  %442 = vmatpush.msra.mxu2 %v435_v1 }
  0x2a   :  { %178 = vmatpush.msra.mxu0 %v131_v26  ;;  %617 = vmatpush.msra.mxu3 %v131_v26  ;;  %v93_v26 = vld [vmem:[#allocation2 + $0xe0] sm:$0xff] }
  0x2b   :  { %291 = vmatpush.msra.mxu1 %v147_v27 }
  0x2c   :  { %179 = vmatpush.msra.mxu0 %v130_v28  ;;  %618 = vmatpush.msra.mxu3 %v130_v28  ;;  %v94_v28 = vld [vmem:[#allocation2 + $0xe8] sm:$0xff] }
  0x2d   :  { %292 = vmatpush.msra.mxu1 %v146_v29 }
  0x2e   :  { %180 = vmatpush.msra.mxu0 %v129_v30  ;;  %619 = vmatpush.msra.mxu3 %v129_v30  ;;  %v128_v30 = vld [vmem:[#allocation2 + $0x1f8] sm:$0xff] }
  0x2f   :  { %181 = vmatmul.f32.vlgmr.msra.gmra.mxu0 %v65_v31  ;;  %253 = vmatmul.f32.vlgmr.msra.gmra.mxu3 %v113_v32  ;;  %v96_v31 = vld [vmem:[#allocation2 + $0xf8] sm:$0xff]  ;;  %v850_v32 = vld [vmem:[%s916_s2] ss:$0 sm:$0xff]  ;;  %s770_s2 = smov [#allocation8]  }
  0x30   :  { %293 = vmatpush.msra.mxu1 %v145_v33  ;;  %620 = vmatpush.msrb.mxu3 %v811_v2  ;;  %v434_v2 = vld [vmem:[#allocation7 + $0x58] sm:$0xff]  ;;  %s588_s7 = sshll.u32 %s770_s2, 4  ;;  %s589_s7 = int_to_ptr.vmem [resolvable:$true] %s588_s7 }
  0x31   :  { %294 = vmatmul.f32.vlgmr.msra.gmra.mxu1 %v66_v34  ;;  %443 = vmatpush.msra.mxu2 %v434_v2  ;;  %v97_v34 = vld [vmem:[#allocation2 + $0x100] sm:$0xff] }
  0x32   :  { %621 = vmatpush.msrb.mxu3 %v813_v3  ;;  %v433_v3 = vld [vmem:[#allocation7 + $0x50] sm:$0xff] }
  0x33   :  { %444 = vmatpush.msra.mxu2 %v433_v3 }
  0x34   :  { %622 = vmatpush.msrb.mxu3 %v816_v5  ;;  %v118_v5 = vld [vmem:[#allocation2 + $0x1a8] sm:$0xff] }
  0x36   :  { %623 = vmatpush.msrb.mxu3 %v819_v7  ;;  %v432_v7 = vld [vmem:[#allocation7 + $0x48] sm:$0xff] }
  0x37   :  { %184 = vmatmul.f32.gmra.mxu0 %v67_v35  ;;  %256 = vmatmul.f32.gmra.mxu3 %v115_v36 }
  0x38   :  { %624 = vmatpush.msrb.mxu3 %v822_v9  ;;  %445 = vmatpush.msra.mxu2 %v432_v7  ;;  %v430_v9 = vld [vmem:[#allocation7 + $0x38] sm:$0xff] }
  0x39   :  { %297 = vmatmul.f32.gmra.mxu1 %v68_v37  ;;  %v98_v37 = vld [vmem:[#allocation2 + $0x108] sm:$0xff] }
  0x3a   :  { %625 = vmatpush.msrb.mxu3 %v825_v11  ;;  %446 = vmatpush.msra.mxu2 %v431_v8  ;;  %v87_v11 = vld [vmem:[#allocation2 + $0xb0] sm:$0xff] }
  0x3c   :  { %626 = vmatpush.msrb.mxu3 %v828_v13  ;;  %447 = vmatpush.msra.mxu2 %v430_v9  ;;  %v88_v13 = vld [vmem:[#allocation2 + $0xb8] sm:$0xff] }
  0x3e   :  { %627 = vmatpush.msrb.mxu3 %v831_v15  ;;  %448 = vmatpush.msra.mxu2 %v429_v10  ;;  %v427_v15 = vld [vmem:[#allocation7 + $0x20] sm:$0xff] }
  0x3f   :  { %187 = vmatmul.f32.gmra.mxu0 %v69_v38  ;;  %259 = vmatmul.f32.gmra.mxu3 %v117_v39 }
  0x40   :  { %628 = vmatpush.msrb.mxu3 %v834_v17  ;;  %449 = vmatpush.msra.mxu2 %v428_v14  ;;  %v89_v17 = vld [vmem:[#allocation2 + $0xc0] sm:$0xff] }
  0x41   :  { %300 = vmatmul.f32.gmra.mxu1 %v70_v40 }
  0x42   :  { %629 = vmatpush.msrb.mxu3 %v151_v19  ;;  %450 = vmatpush.msra.mxu2 %v427_v15  ;;  %v425_v19 = vld [vmem:[#allocation7 + $0x10] sm:$0xff] }
  0x44   :  { %630 = vmatpush.msrb.mxu3 %v150_v21  ;;  %451 = vmatpush.msra.mxu2 %v426_v16  ;;  %v424_v21 = vld [vmem:[#allocation7 + $0x8] sm:$0xff] }
  0x46   :  { %631 = vmatpush.msrb.mxu3 %v149_v23  ;;  %452 = vmatpush.msra.mxu2 %v425_v19  ;;  %v91_v23 = vld [vmem:[#allocation2 + $0xd0] sm:$0xff] }
  0x47   :  { %190 = vmatmul.f32.gmra.mxu0 %v71_v41  ;;  %262 = vmatmul.f32.gmra.mxu3 %v119_v42  ;;  %v99_v42 = vld [vmem:[#allocation2 + $0x110] sm:$0xff] }
  0x48   :  { %632 = vmatpush.msrb.mxu3 %v148_v25  ;;  %453 = vmatpush.msra.mxu2 %v424_v21  ;;  %v92_v25 = vld [vmem:[#allocation2 + $0xd8] sm:$0xff] }
  0x49   :  { %303 = vmatmul.f32.gmra.mxu1 %v72_v43 }
  0x4a   :  { %633 = vmatpush.msrb.mxu3 %v147_v27  ;;  %454 = vmatpush.msra.mxu2 %v423_v22  ;;  %v126_v27 = vld [vmem:[#allocation2 + $0x1e8] sm:$0xff] }
  0x4c   :  { %634 = vmatpush.msrb.mxu3 %v146_v29  ;;  %v95_v29 = vld [vmem:[#allocation2 + $0xf0] sm:$0xff] }
  0x4e   :  { %635 = vmatpush.msrb.mxu3 %v145_v33 }
  0x4f   :  { %193 = vmatmul.f32.gmra.mxu0 %v73_v44  ;;  %265 = vmatmul.f32.gmra.mxu3 %v121_v45  ;;  %v100_v45 = vld [vmem:[#allocation2 + $0x118] sm:$0xff] }
  0x50   :  { %636 = vmatpush.msra.mxu3 %v438_v59 }
  0x51   :  { %306 = vmatmul.f32.gmra.mxu1 %v74_v46 }
  0x52   :  { %637 = vmatpush.msra.mxu3 %v437_v60 }
  0x54   :  { %638 = vmatpush.msra.mxu3 %v436_v0 }
  0x56   :  { %639 = vmatpush.msra.mxu3 %v435_v1 }
  0x57   :  { %196 = vmatmul.f32.gmra.mxu0 %v75_v47  ;;  %268 = vmatmul.f32.gmra.mxu3 %v123_v48 }
  0x58   :  { %640 = vmatpush.msra.mxu3 %v434_v2  ;;  %v105_v2 = vld [vmem:[#allocation2 + $0x140] sm:$0xff] }
  0x59   :  { %309 = vmatmul.f32.gmra.mxu1 %v76_v49 }
  0x5a   :  { %641 = vmatpush.msra.mxu3 %v433_v3 }
  0x5c   :  { %642 = vmatpush.msra.mxu3 %v432_v7 }
  0x5e   :  { %643 = vmatpush.msra.mxu3 %v431_v8 }
  0x5f   :  { %199 = vmatmul.f32.gmra.mxu0 %v77_v50  ;;  %271 = vmatmul.f32.gmra.mxu3 %v125_v51  ;;  %v101_v50 = vld [vmem:[#allocation2 + $0x120] sm:$0xff] }
  0x60   :  { %644 = vmatpush.msra.mxu3 %v430_v9 }
  0x61   :  { %312 = vmatmul.f32.gmra.mxu1 %v78_v52 }
  0x62   :  { %645 = vmatpush.msra.mxu3 %v429_v10  ;;  %v107_v10 = vld [vmem:[#allocation2 + $0x150] sm:$0xff] }
  0x64   :  { %646 = vmatpush.msra.mxu3 %v428_v14 }
  0x66   :  { %647 = vmatpush.msra.mxu3 %v427_v15 }
  0x67   :  { %202 = vmatmul.f32.gmra.mxu0 %v79_v53  ;;  %274 = vmatmul.f32.gmra.mxu3 %v127_v54  ;;  %v102_v53 = vld [vmem:[#allocation2 + $0x128] sm:$0xff] }
  0x68   :  { %648 = vmatpush.msra.mxu3 %v426_v16 }
  0x69   :  { %315 = vmatmul.f32.gmra.mxu1 %v80_v55 }
  0x6a   :  { %649 = vmatpush.msra.mxu3 %v425_v19 }
  0x6c   :  { %650 = vmatpush.msra.mxu3 %v424_v21  ;;  %v110_v21 = vld [vmem:[#allocation2 + $0x168] sm:$0xff] }
  0x6e   :  { %651 = vmatpush.msra.mxu3 %v423_v22 }
  0x6f   :  { %205 = vmatmul.f32.gmra.mxu0 %v81_v56  ;;  %366 = vmatmul.f32.vlgmr.msrb.gmra.mxu3 %v114_v57 }
  0x71   :  { %318 = vmatmul.f32.gmra.mxu1 %v82_v58  ;;  %v103_v58 = vld [vmem:[#allocation2 + $0x130] sm:$0xff] }
  0x77   :  { %208 = vmatmul.f32.gmra.mxu0 %v83_v61  ;;  %369 = vmatmul.f32.gmra.mxu3 %v116_v62  ;;  %v104_v61 = vld [vmem:[#allocation2 + $0x138] sm:$0xff] }
  0x79   :  { %321 = vmatmul.f32.gmra.mxu1 %v84_v63 }
  0x7f   :  { %211 = vmatmul.f32.gmra.mxu0 %v85_v4  ;;  %372 = vmatmul.f32.gmra.mxu3 %v118_v5  ;;  %v106_v5 = vld [vmem:[#allocation2 + $0x148] sm:$0xff] }
  0x81   :  { %324 = vmatmul.f32.gmra.mxu1 %v86_v6 }
  0x87   :  { %214 = vmatmul.f32.gmra.mxu0 %v87_v11  ;;  %375 = vmatmul.f32.gmra.mxu3 %v120_v12 }
  0x89   :  { %327 = vmatmul.f32.gmra.mxu1 %v88_v13  ;;  %v108_v13 = vld [vmem:[#allocation2 + $0x158] sm:$0xff] }
  0x8f   :  { %217 = vmatmul.f32.gmra.mxu0 %v89_v17  ;;  %378 = vmatmul.f32.gmra.mxu3 %v122_v18  ;;  %v109_v18 = vld [vmem:[#allocation2 + $0x160] sm:$0xff] }
  0x91   :  { %330 = vmatmul.f32.gmra.mxu1 %v90_v20 }
  0x97   :  { %220 = vmatmul.f32.gmra.mxu0 %v91_v23  ;;  %381 = vmatmul.f32.gmra.mxu3 %v124_v24 }
  0x99   :  { %333 = vmatmul.f32.gmra.mxu1 %v92_v25 }
  0x9f   :  { %223 = vmatmul.f32.gmra.mxu0 %v93_v26  ;;  %384 = vmatmul.f32.gmra.mxu3 %v126_v27  ;;  %v111_v26 = vld [vmem:[#allocation2 + $0x170] sm:$0xff] }
  0xa1   :  { %336 = vmatmul.f32.gmra.mxu1 %v94_v28 }
  0xa7   :  { %226 = vmatmul.f32.gmra.mxu0 %v95_v29  ;;  %387 = vmatmul.f32.gmra.mxu3 %v128_v30  ;;  %v112_v29 = vld [vmem:[#allocation2 + $0x178] sm:$0xff] }
  0xa9   :  { %339 = vmatmul.f32.gmra.mxu1 %v96_v31 }
  0xac   :  { %v182_v33 = vpop.f32.mrf.mxu0 }
  0xad   :  { %v183_v35 = vadd.f32 %v850_v32, %v182_v33 }
  0xae   :  { %v295_v36 = vpop.f32.mrf.mxu1 }
  0xaf   :  { %v296_v38 = vadd.f32 %v295_v36, %v183_v35  ;;  %229 = vmatmul.f32.gmra.mxu0 %v97_v34 }
  0xb1   :  { %v391_v39 = vmax.f32 %v296_v38, 0.0  ;;  %342 = vmatmul.f32.gmra.mxu1 %v98_v37 }
  0xb2   :  { %v853_v40 = vpop.f32.mrf.mxu3 }
  0xb3   :  { %455 = vmatmul.f32.vlgmr.msra.gmra.mxu2 %v391_v39  ;;  %v255_v38 = vadd.f32 %v850_v32, %v853_v40 }
  0xb4   :  { %v185_v41 = vpop.f32.mrf.mxu0 }
  0xb5   :  { %v186_v43 = vadd.f32 %v850_v32, %v185_v41 }
  0xb6   :  { %v298_v44 = vpop.f32.mrf.mxu1 }
  0xb7   :  { %v299_v46 = vadd.f32 %v298_v44, %v186_v43  ;;  %232 = vmatmul.f32.gmra.mxu0 %v99_v42 }
  0xb9   :  { %v392_v47 = vmax.f32 %v299_v46, 0.0  ;;  %345 = vmatmul.f32.gmra.mxu1 %v100_v45 }
  0xba   :  { %v856_v48 = vpop.f32.mrf.mxu3 }
  0xbb   :  { %458 = vmatmul.f32.gmra.mxu2 %v392_v47 }
  0xbc   :  { %v188_v49 = vpop.f32.mrf.mxu0 }
  0xbd   :  { %v189_v51 = vadd.f32 %v850_v32, %v188_v49  ;;  %v258_v49 = vadd.f32 %v850_v32, %v856_v48 }
  0xbe   :  { %v301_v52 = vpop.f32.mrf.mxu1 }
  0xbf   :  { %v302_v54 = vadd.f32 %v301_v52, %v189_v51  ;;  %235 = vmatmul.f32.gmra.mxu0 %v101_v50 }
  0xc1   :  { %v393_v55 = vmax.f32 %v302_v54, 0.0  ;;  %348 = vmatmul.f32.gmra.mxu1 %v102_v53 }
  0xc2   :  { %v859_v56 = vpop.f32.mrf.mxu3 }
  0xc3   :  { %461 = vmatmul.f32.gmra.mxu2 %v393_v55 }
  0xc4   :  { %v191_v57 = vpop.f32.mrf.mxu0 }
  0xc5   :  { %v192_v59 = vadd.f32 %v850_v32, %v191_v57 }
  0xc6   :  { %v304_v60 = vpop.f32.mrf.mxu1 }
  0xc7   :  { %v305_v62 = vadd.f32 %v304_v60, %v192_v59  ;;  %238 = vmatmul.f32.gmra.mxu0 %v103_v58  ;;  %v261_v58 = vadd.f32 %v850_v32, %v859_v56 }
  0xc9   :  { %v394_v63 = vmax.f32 %v305_v62, 0.0  ;;  %351 = vmatmul.f32.gmra.mxu1 %v104_v61 }
  0xca   :  { %v862_v0 = vpop.f32.mrf.mxu3 }
  0xcb   :  { %464 = vmatmul.f32.gmra.mxu2 %v394_v63 }
  0xcc   :  { %v194_v1 = vpop.f32.mrf.mxu0 }
  0xcd   :  { %v195_v3 = vadd.f32 %v850_v32, %v194_v1 }
  0xce   :  { %v307_v4 = vpop.f32.mrf.mxu1 }
  0xcf   :  { %v308_v6 = vadd.f32 %v307_v4, %v195_v3  ;;  %241 = vmatmul.f32.gmra.mxu0 %v105_v2  ;;  %v264_v3 = vadd.f32 %v850_v32, %v862_v0 }
  0xd1   :  { %v395_v7 = vmax.f32 %v308_v6, 0.0  ;;  %354 = vmatmul.f32.gmra.mxu1 %v106_v5 }
  0xd2   :  { %v865_v8 = vpop.f32.mrf.mxu3 }
  0xd3   :  { %467 = vmatmul.f32.gmra.mxu2 %v395_v7 }
  0xd4   :  { %v197_v9 = vpop.f32.mrf.mxu0 }
  0xd5   :  { %v198_v11 = vadd.f32 %v850_v32, %v197_v9 }
  0xd6   :  { %v310_v12 = vpop.f32.mrf.mxu1 }
  0xd7   :  { %v311_v14 = vadd.f32 %v310_v12, %v198_v11  ;;  %244 = vmatmul.f32.gmra.mxu0 %v107_v10  ;;  %v267_v12 = vadd.f32 %v850_v32, %v865_v8 }
  0xd9   :  { %v396_v15 = vmax.f32 %v311_v14, 0.0  ;;  %357 = vmatmul.f32.gmra.mxu1 %v108_v13 }
  0xda   :  { %v868_v16 = vpop.f32.mrf.mxu3 }
  0xdb   :  { %470 = vmatmul.f32.gmra.mxu2 %v396_v15 }
  0xdc   :  { %v200_v17 = vpop.f32.mrf.mxu0 }
  0xdd   :  { %v201_v19 = vadd.f32 %v850_v32, %v200_v17 }
  0xde   :  { %v313_v20 = vpop.f32.mrf.mxu1 }
  0xdf   :  { %v314_v22 = vadd.f32 %v313_v20, %v201_v19  ;;  %247 = vmatmul.f32.gmra.mxu0 %v109_v18 }
  0xe1   :  { %v397_v23 = vmax.f32 %v314_v22, 0.0  ;;  %360 = vmatmul.f32.gmra.mxu1 %v110_v21  ;;  %v270_v21 = vadd.f32 %v850_v32, %v868_v16 }
  0xe2   :  { %v871_v24 = vpop.f32.mrf.mxu3 }
  0xe3   :  { %473 = vmatmul.f32.gmra.mxu2 %v397_v23 }
  0xe4   :  { %v203_v25 = vpop.f32.mrf.mxu0 }
  0xe5   :  { %v204_v27 = vadd.f32 %v850_v32, %v203_v25 }
  0xe6   :  { %v316_v28 = vpop.f32.mrf.mxu1 }
  0xe7   :  { %v317_v30 = vadd.f32 %v316_v28, %v204_v27  ;;  %250 = vmatmul.f32.gmra.mxu0 %v111_v26 }
  0xe9   :  { %v398_v31 = vmax.f32 %v317_v30, 0.0  ;;  %363 = vmatmul.f32.gmra.mxu1 %v112_v29  ;;  %v273_v30 = vadd.f32 %v850_v32, %v871_v24 }
  0xea   :  { %v874_v33 = vpop.f32.mrf.mxu3 }
  0xeb   :  { %476 = vmatmul.f32.gmra.mxu2 %v398_v31 }
  0xec   :  { %v206_v34 = vpop.f32.mrf.mxu0 }
  0xed   :  { %v207_v35 = vadd.f32 %v850_v32, %v206_v34 }
  0xee   :  { %v319_v36 = vpop.f32.mrf.mxu1 }
  0xef   :  { %v320_v37 = vadd.f32 %v319_v36, %v207_v35 }
  0xf1   :  { %v399_v39 = vmax.f32 %v320_v37, 0.0 }
  0xf2   :  { %v367_v41 = vpop.f32.mrf.mxu3 }
  0xf3   :  { %v368_v42 = vadd.f32 %v367_v41, %v255_v38  ;;  %479 = vmatmul.f32.gmra.mxu2 %v399_v39  ;;  %v276_v41 = vadd.f32 %v850_v32, %v874_v33 }
  0xf4   :  { %v209_v43 = vpop.f32.mrf.mxu0 }
  0xf5   :  { %v415_v44 = vmax.f32 %v368_v42, 0.0  ;;  %v210_v45 = vadd.f32 %v850_v32, %v209_v43 }
  0xf6   :  { %v322_v46 = vpop.f32.mrf.mxu1 }
  0xf7   :  { %v323_v47 = vadd.f32 %v322_v46, %v210_v45  ;;  %527 = vmatmul.f32.vlgmr.msra.gmra.mxu3 %v415_v44 }
  0xf9   :  { %v400_v50 = vmax.f32 %v323_v47, 0.0 }
  0xfa   :  { %v370_v51 = vpop.f32.mrf.mxu3 }
  0xfb   :  { %v371_v52 = vadd.f32 %v370_v51, %v258_v49  ;;  %482 = vmatmul.f32.gmra.mxu2 %v400_v50 }
  0xfc   :  { %v212_v53 = vpop.f32.mrf.mxu0 }
  0xfd   :  { %v416_v40 = vmax.f32 %v371_v52, 0.0  ;;  %v213_v54 = vadd.f32 %v850_v32, %v212_v53 }
  0xfe   :  { %v325_v55 = vpop.f32.mrf.mxu1 }
  0xff   :  { %v326_v57 = vadd.f32 %v325_v55, %v213_v54  ;;  %530 = vmatmul.f32.gmra.mxu3 %v416_v40 }
 0x101   :  { %v401_v59 = vmax.f32 %v326_v57, 0.0 }
 0x102   :  { %v373_v60 = vpop.f32.mrf.mxu3 }
 0x103   :  { %v374_v61 = vadd.f32 %v373_v60, %v261_v58  ;;  %485 = vmatmul.f32.gmra.mxu2 %v401_v59 }
 0x104   :  { %v215_v62 = vpop.f32.mrf.mxu0 }
 0x105   :  { %v417_v48 = vmax.f32 %v374_v61, 0.0  ;;  %v216_v63 = vadd.f32 %v850_v32, %v215_v62 }
 0x106   :  { %v328_v1 = vpop.f32.mrf.mxu1 }
 0x107   :  { %v329_v2 = vadd.f32 %v328_v1, %v216_v63  ;;  %533 = vmatmul.f32.gmra.mxu3 %v417_v48 }
 0x109   :  { %v402_v4 = vmax.f32 %v329_v2, 0.0 }
 0x10a   :  { %v376_v5 = vpop.f32.mrf.mxu3 }
 0x10b   :  { %v377_v6 = vadd.f32 %v376_v5, %v264_v3  ;;  %488 = vmatmul.f32.gmra.mxu2 %v402_v4 }
 0x10c   :  { %v218_v7 = vpop.f32.mrf.mxu0 }
 0x10d   :  { %v418_v56 = vmax.f32 %v377_v6, 0.0  ;;  %v219_v9 = vadd.f32 %v850_v32, %v218_v7 }
 0x10e   :  { %v331_v10 = vpop.f32.mrf.mxu1 }
 0x10f   :  { %v332_v11 = vadd.f32 %v331_v10, %v219_v9  ;;  %536 = vmatmul.f32.gmra.mxu3 %v418_v56 }
 0x111   :  { %v403_v13 = vmax.f32 %v332_v11, 0.0 }
 0x112   :  { %v379_v14 = vpop.f32.mrf.mxu3 }
 0x113   :  { %v380_v15 = vadd.f32 %v379_v14, %v267_v12  ;;  %491 = vmatmul.f32.gmra.mxu2 %v403_v13 }
 0x114   :  { %v221_v17 = vpop.f32.mrf.mxu0 }
 0x115   :  { %v419_v0 = vmax.f32 %v380_v15, 0.0  ;;  %v222_v18 = vadd.f32 %v850_v32, %v221_v17 }
 0x116   :  { %v334_v19 = vpop.f32.mrf.mxu1 }
 0x117   :  { %v335_v20 = vadd.f32 %v334_v19, %v222_v18  ;;  %539 = vmatmul.f32.gmra.mxu3 %v419_v0 }
 0x119   :  { %v404_v22 = vmax.f32 %v335_v20, 0.0 }
 0x11a   :  { %v382_v23 = vpop.f32.mrf.mxu3 }
 0x11b   :  { %v383_v25 = vadd.f32 %v382_v23, %v270_v21  ;;  %494 = vmatmul.f32.gmra.mxu2 %v404_v22 }
 0x11c   :  { %v224_v26 = vpop.f32.mrf.mxu0 }
 0x11d   :  { %v420_v8 = vmax.f32 %v383_v25, 0.0  ;;  %v225_v27 = vadd.f32 %v850_v32, %v224_v26 }
 0x11e   :  { %v337_v28 = vpop.f32.mrf.mxu1 }
 0x11f   :  { %v338_v29 = vadd.f32 %v337_v28, %v225_v27  ;;  %542 = vmatmul.f32.gmra.mxu3 %v420_v8 }
 0x121   :  { %v405_v31 = vmax.f32 %v338_v29, 0.0 }
 0x122   :  { %v385_v34 = vpop.f32.mrf.mxu3 }
 0x123   :  { %v386_v35 = vadd.f32 %v385_v34, %v273_v30  ;;  %497 = vmatmul.f32.gmra.mxu2 %v405_v31 }
 0x124   :  { %v227_v36 = vpop.f32.mrf.mxu0 }
 0x125   :  { %v421_v16 = vmax.f32 %v386_v35, 0.0  ;;  %v228_v37 = vadd.f32 %v850_v32, %v227_v36 }
 0x126   :  { %v340_v38 = vpop.f32.mrf.mxu1 }
 0x127   :  { %v341_v39 = vadd.f32 %v340_v38, %v228_v37  ;;  %545 = vmatmul.f32.gmra.mxu3 %v421_v16 }
 0x129   :  { %v406_v42 = vmax.f32 %v341_v39, 0.0 }
 0x12a   :  { %v388_v43 = vpop.f32.mrf.mxu3 }
 0x12b   :  { %v389_v44 = vadd.f32 %v388_v43, %v276_v41  ;;  %500 = vmatmul.f32.gmra.mxu2 %v406_v42 }
 0x12c   :  { %v230_v45 = vpop.f32.mrf.mxu0 }
 0x12d   :  { %v422_v24 = vmax.f32 %v389_v44, 0.0  ;;  %v231_v46 = vadd.f32 %v850_v32, %v230_v45 }
 0x12e   :  { %v343_v47 = vpop.f32.mrf.mxu1 }
 0x12f   :  { %v344_v49 = vadd.f32 %v343_v47, %v231_v46  ;;  %548 = vmatmul.f32.gmra.mxu3 %v422_v24 }
 0x131   :  { %v407_v50 = vmax.f32 %v344_v49, 0.0 }
 0x133   :  { %503 = vmatmul.f32.gmra.mxu2 %v407_v50 }
 0x134   :  { %v233_v51 = vpop.f32.mrf.mxu0 }
 0x135   :  { %v234_v52 = vadd.f32 %v850_v32, %v233_v51 }
 0x136   :  { %v346_v53 = vpop.f32.mrf.mxu1  ;;  %v456_v40 = vpop.f32.mrf.mxu2 }
 0x137   :  { %v347_v54 = vadd.f32 %v346_v53, %v234_v52  ;;  %552 = vst [vmem:[#allocation8] sm:$0xff] %v456_v40 }
 0x139   :  { %v408_v33 = vmax.f32 %v347_v54, 0.0 }
 0x13b   :  { %506 = vmatmul.f32.gmra.mxu2 %v408_v33 }
 0x13c   :  { %v236_v55 = vpop.f32.mrf.mxu0 }
 0x13d   :  { %v237_v57 = vadd.f32 %v850_v32, %v236_v55 }
 0x13e   :  { %v349_v58 = vpop.f32.mrf.mxu1  ;;  %v459_v59 = vpop.f32.mrf.mxu2 }
 0x13f   :  { %v350_v60 = vadd.f32 %v349_v58, %v237_v57  ;;  %553 = vst [vmem:[#allocation8 + $0x8] sm:$0xff] %v459_v59 }
 0x141   :  { %v409_v61 = vmax.f32 %v350_v60, 0.0 }
 0x143   :  { %509 = vmatmul.f32.gmra.mxu2 %v409_v61 }
 0x144   :  { %v239_v62 = vpop.f32.mrf.mxu0 }
 0x145   :  { %v240_v48 = vadd.f32 %v850_v32, %v239_v62 }
 0x146   :  { %v352_v63 = vpop.f32.mrf.mxu1  ;;  %v462_v1 = vpop.f32.mrf.mxu2 }
 0x147   :  { %v353_v2 = vadd.f32 %v352_v63, %v240_v48  ;;  %554 = vst [vmem:[#allocation8 + $0x10] sm:$0xff] %v462_v1 }
 0x149   :  { %v410_v3 = vmax.f32 %v353_v2, 0.0 }
 0x14b   :  { %512 = vmatmul.f32.gmra.mxu2 %v410_v3 }
 0x14c   :  { %v242_v4 = vpop.f32.mrf.mxu0 }
 0x14d   :  { %v243_v5 = vadd.f32 %v850_v32, %v242_v4 }
 0x14e   :  { %v355_v6 = vpop.f32.mrf.mxu1  ;;  %v465_v7 = vpop.f32.mrf.mxu2 }
 0x14f   :  { %v356_v56 = vadd.f32 %v355_v6, %v243_v5  ;;  %555 = vst [vmem:[#allocation8 + $0x18] sm:$0xff] %v465_v7 }
 0x151   :  { %v411_v9 = vmax.f32 %v356_v56, 0.0 }
 0x153   :  { %515 = vmatmul.f32.gmra.mxu2 %v411_v9 }
 0x154   :  { %v245_v10 = vpop.f32.mrf.mxu0 }
 0x155   :  { %v246_v11 = vadd.f32 %v850_v32, %v245_v10 }
 0x156   :  { %v358_v12 = vpop.f32.mrf.mxu1  ;;  %v468_v13 = vpop.f32.mrf.mxu2 }
 0x157   :  { %v359_v14 = vadd.f32 %v358_v12, %v246_v11  ;;  %556 = vst [vmem:[#allocation8 + $0x20] sm:$0xff] %v468_v13 }
 0x159   :  { %v412_v15 = vmax.f32 %v359_v14, 0.0 }
 0x15b   :  { %518 = vmatmul.f32.gmra.mxu2 %v412_v15 }
 0x15c   :  { %v248_v17 = vpop.f32.mrf.mxu0 }
 0x15d   :  { %v249_v0 = vadd.f32 %v850_v32, %v248_v17 }
 0x15e   :  { %v361_v18 = vpop.f32.mrf.mxu1  ;;  %v471_v19 = vpop.f32.mrf.mxu2 }
 0x15f   :  { %v362_v20 = vadd.f32 %v361_v18, %v249_v0  ;;  %557 = vst [vmem:[#allocation8 + $0x28] sm:$0xff] %v471_v19 }
 0x161   :  { %v413_v21 = vmax.f32 %v362_v20, 0.0 }
 0x163   :  { %521 = vmatmul.f32.gmra.mxu2 %v413_v21 }
 0x164   :  { %v251_v22 = vpop.f32.mrf.mxu0 }
 0x165   :  { %v252_v23 = vadd.f32 %v850_v32, %v251_v22 }
 0x166   :  { %v364_v25 = vpop.f32.mrf.mxu1  ;;  %v474_v26 = vpop.f32.mrf.mxu2 }
 0x167   :  { %v365_v8 = vadd.f32 %v364_v25, %v252_v23  ;;  %558 = vst [vmem:[#allocation8 + $0x30] sm:$0xff] %v474_v26 }
 0x169   :  { %v414_v27 = vmax.f32 %v365_v8, 0.0 }
 0x16b   :  { %524 = vmatmul.f32.gmra.mxu2 %v414_v27 }
 0x16e   :  { %v477_v28 = vpop.f32.mrf.mxu2 }
 0x16f   :  { %559 = vst [vmem:[#allocation8 + $0x38] sm:$0xff] %v477_v28 }
 0x176   :  { %v480_v29 = vpop.f32.mrf.mxu2 }
 0x177   :  { %560 = vst [vmem:[#allocation8 + $0x40] sm:$0xff] %v480_v29 }
 0x17a   :  { %v528_v30 = vpop.f32.mrf.mxu3 }
 0x17b   :  { %576 = vst [vmem:[#allocation8 + $0xc0] sm:$0xff] %v528_v30 }
 0x17e   :  { %v483_v31 = vpop.f32.mrf.mxu2 }
 0x17f   :  { %561 = vst [vmem:[#allocation8 + $0x48] sm:$0xff] %v483_v31 }
 0x182   :  { %v531_v34 = vpop.f32.mrf.mxu3 }
 0x183   :  { %577 = vst [vmem:[#allocation8 + $0xc8] sm:$0xff] %v531_v34 }
 0x186   :  { %v486_v35 = vpop.f32.mrf.mxu2 }
 0x187   :  { %562 = vst [vmem:[#allocation8 + $0x50] sm:$0xff] %v486_v35 }
 0x18a   :  { %v534_v36 = vpop.f32.mrf.mxu3 }
 0x18b   :  { %578 = vst [vmem:[#allocation8 + $0xd0] sm:$0xff] %v534_v36 }
 0x18e   :  { %v489_v32 = vpop.f32.mrf.mxu2 }
 0x18f   :  { %563 = vst [vmem:[#allocation8 + $0x58] sm:$0xff] %v489_v32 }
 0x192   :  { %v537_v16 = vpop.f32.mrf.mxu3 }
 0x193   :  { %579 = vst [vmem:[#allocation8 + $0xd8] sm:$0xff] %v537_v16 }
 0x196   :  { %v492_v37 = vpop.f32.mrf.mxu2 }
 0x197   :  { %564 = vst [vmem:[#allocation8 + $0x60] sm:$0xff] %v492_v37 }
 0x19a   :  { %v540_v38 = vpop.f32.mrf.mxu3 }
 0x19b   :  { %580 = vst [vmem:[#allocation8 + $0xe0] sm:$0xff] %v540_v38 }
 0x19e   :  { %v495_v39 = vpop.f32.mrf.mxu2 }
 0x19f   :  { %565 = vst [vmem:[#allocation8 + $0x68] sm:$0xff] %v495_v39 }
 0x1a2   :  { %v543_v41 = vpop.f32.mrf.mxu3 }
 0x1a3   :  { %581 = vst [vmem:[#allocation8 + $0xe8] sm:$0xff] %v543_v41 }
 0x1a6   :  { %v498_v42 = vpop.f32.mrf.mxu2 }
 0x1a7   :  { %566 = vst [vmem:[#allocation8 + $0x70] sm:$0xff] %v498_v42 }
 0x1aa   :  { %v546_v43 = vpop.f32.mrf.mxu3 }
 0x1ab   :  { %582 = vst [vmem:[#allocation8 + $0xf0] sm:$0xff] %v546_v43 }
 0x1ae   :  { %v501_v44 = vpop.f32.mrf.mxu2 }
 0x1af   :  { %567 = vst [vmem:[#allocation8 + $0x78] sm:$0xff] %v501_v44 }
 0x1b2   :  { %v549_v45 = vpop.f32.mrf.mxu3 }
 0x1b3   :  { %583 = vst [vmem:[#allocation8 + $0xf8] sm:$0xff] %v549_v45 }
 0x1b6   :  { %v504_v24 = vpop.f32.mrf.mxu2 }
 0x1b7   :  { %568 = vst [vmem:[#allocation8 + $0x80] sm:$0xff] %v504_v24 }
 0x1be   :  { %v507_v46 = vpop.f32.mrf.mxu2 }
 0x1bf   :  { %569 = vst [vmem:[#allocation8 + $0x88] sm:$0xff] %v507_v46 }
 0x1c6   :  { %v510_v47 = vpop.f32.mrf.mxu2 }
 0x1c7   :  { %570 = vst [vmem:[#allocation8 + $0x90] sm:$0xff] %v510_v47 }
 0x1ce   :  { %v513_v49 = vpop.f32.mrf.mxu2 }
 0x1cf   :  { %571 = vst [vmem:[#allocation8 + $0x98] sm:$0xff] %v513_v49 }
 0x1d6   :  { %v516_v50 = vpop.f32.mrf.mxu2 }
 0x1d7   :  { %572 = vst [vmem:[#allocation8 + $0xa0] sm:$0xff] %v516_v50 }
 0x1de   :  { %v519_v51 = vpop.f32.mrf.mxu2 }
 0x1df   :  { %573 = vst [vmem:[#allocation8 + $0xa8] sm:$0xff] %v519_v51 }
 0x1e6   :  { %v522_v52 = vpop.f32.mrf.mxu2 }
 0x1e7   :  { %574 = vst [vmem:[#allocation8 + $0xb0] sm:$0xff] %v522_v52 }
 0x1ee   :  { %v525_v53 = vpop.f32.mrf.mxu2 }
 0x1ef   :  { %575 = vst [vmem:[#allocation8 + $0xb8] sm:$0xff] %v525_v53 }
 0x1f0   :  { %596 = dma.vmem_to_hbm [thread:$0]  %s589_s7, 4096, %s591_s10, [#allocation4], %s764_s23, %s764_s23, %s765_s24  }
 0x1f1   :  { %761 = dma.done.wait [#allocation4], 4096  }
 0x1f2   :  { %762 = vsyncadd [#allocation4], 4294963200 }
 0x1f3   :  { %601 = vsyncpa [#allocation3], 1 }
 0x1f4   :  { %602 = vsyncpa [#allocation6], 1 }
 0x1f5   :  { %603 = vsyncpa [#allocation4], 1 }

</bundles_post_ra>
